<compile_context>
chip_gen: v7x
topology: tpu7x:2x2x1
jax: 0.10.0
libtpu: 0.0.40
codegen_flags: <defaults>
</compile_context>

<pallas_src>
import functools

import jax
import jax.numpy as jnp
from jax.experimental import pallas as pl
from jax.experimental.pallas import tpu as pltpu

_NEG_BIG = -1e30  # padding value for vocab-pad columns of b_out (exp -> 0)


# --------------------------------------------------------------------------
# Helpers
# --------------------------------------------------------------------------
def _round_up(x, m):
    return int(pl.cdiv(x, m) * m)


def _pad_rows(x, rows):
    return jnp.pad(x, ((0, rows - x.shape[0]), (0, 0)))


def _vmem_capacity_bytes():
    try:
        return int(pltpu.get_tpu_info().vmem_capacity_bytes)
    except Exception:
        return 64 * 1024 * 1024  # conservative: v7x physical VMEM per core


def make_plan(B, E, H, V, *, max_tv=None):
    """Static tiling / VMEM plan.  Computed once, outside the decode loop."""
    cap = _vmem_capacity_bytes()
    vmem_limit = max(32 << 20, (3 * cap) // 4)      # ~96 MiB on v5e/v6e, ~48 MiB on v7x
    vmem_limit = min(vmem_limit, 112 << 20)

    TB = min(_round_up(B, 8), 128)                  # whole batch in one (or few) tiles
    B_pad = _round_up(B, TB)

    # TV-independent, double-buffered VMEM of the main kernel (bytes).
    fixed = (2 * 2 * 3 * H * (E + 2 * H)            # bf16 fused gate weights (2 bufs)
             + 2 * 4 * 6 * H                        # f32 gate biases
             + 2 * TB * (2 * E + 2 * H + 4 * H)     # emb/ctx (bf16) + h0 (f32)
             + 2 * TB * 4 * H                       # h_new output block
             + TB * (2 * H + 16))                   # scratch (bf16 h cache, m, l)
    per_col_main = 4 * H + 8 + 8 * TB               # w_out + b_out + logits/logp out
    per_col_fin = 12 * B_pad + 8                    # finalize: bf16 in + f32 out, 2 bufs

    budget_main = vmem_limit - fixed - (2 << 20)
    budget_fin = vmem_limit - (1 << 20)
    tv = min(budget_main // per_col_main, budget_fin // per_col_fin)
    tv = max(128, (tv // 128) * 128)
    if max_tv is not None:
        tv = max(128, min(tv, (max_tv // 128) * 128))
    tv = min(tv, _round_up(V, 128))
    V_pad = _round_up(V, tv)

    return dict(B=int(B), E=int(E), H=int(H), V=int(V),
                TB=int(TB), B_pad=int(B_pad), TV=int(tv), V_pad=int(V_pad),
                n_bt=int(B_pad // TB), n_vt=int(V_pad // tv),
                vmem_limit=int(vmem_limit))


# --------------------------------------------------------------------------
# Shared GRU cell (fused gate columns [r | z | n], PyTorch nn.GRU equations)
# --------------------------------------------------------------------------
def _gru_cell(emb, ctx, h, wie_ref, wic_ref, wh_ref, bi_ref, bh_ref):
    H = h.shape[-1]
    gi = (jnp.dot(emb, wie_ref[...], preferred_element_type=jnp.float32)
          + jnp.dot(ctx, wic_ref[...], preferred_element_type=jnp.float32)
          + bi_ref[...])                                            # (TB, 3H)
    gh = (jnp.dot(h.astype(wh_ref.dtype), wh_ref[...],
                  preferred_element_type=jnp.float32)
          + bh_ref[...])                                            # (TB, 3H)
    r = jax.nn.sigmoid(gi[:, :H] + gh[:, :H])
    z = jax.nn.sigmoid(gi[:, H:2 * H] + gh[:, H:2 * H])
    n = jnp.tanh(gi[:, 2 * H:] + r * gh[:, 2 * H:])
    return (1.0 - z) * n + z * h


# --------------------------------------------------------------------------
# Kernel A: vocab fits one VMEM tile -> GRU + projection + log-softmax fused,
#           no logits intermediate, no second pass.
# --------------------------------------------------------------------------
def _decoder_fused_kernel(emb_ref, ctx_ref, h0_ref,
                          wie_ref, wic_ref, wh_ref, bi_ref, bh_ref,
                          wout_ref, bout_ref,
                          logp_ref, hnew_ref):
    h_new = _gru_cell(emb_ref[...], ctx_ref[...], h0_ref[...],
                      wie_ref, wic_ref, wh_ref, bi_ref, bh_ref)
    hnew_ref[...] = h_new
    logits = (jnp.dot(h_new.astype(wout_ref.dtype), wout_ref[...],
                      preferred_element_type=jnp.float32)
              + bout_ref[...])                                      # (TB, Vp) f32
    m = jnp.max(logits, axis=-1, keepdims=True)
    lse = m + jnp.log(jnp.sum(jnp.exp(logits - m), axis=-1, keepdims=True))
    logp_ref[...] = logits - lse


# --------------------------------------------------------------------------
# Kernel B1: vocab streamed in TV-wide tiles; GRU on first tile only,
#            bf16 logits + online log-sum-exp across tiles.
# --------------------------------------------------------------------------
def _decoder_streamed_kernel(emb_ref, ctx_ref, h0_ref,
                             wie_ref, wic_ref, wh_ref, bi_ref, bh_ref,
                             wout_ref, bout_ref,
                             logits_ref, lse_ref, hnew_ref,
                             hbf_scr, m_scr, l_scr):
    j = pl.program_id(1)                         # vocab-tile index ("arbitrary")

    @pl.when(j == 0)
    def _():
        h_new = _gru_cell(emb_ref[...], ctx_ref[...], h0_ref[...],
                          wie_ref, wic_ref, wh_ref, bi_ref, bh_ref)
        hnew_ref[...] = h_new
        hbf_scr[...] = h_new.astype(hbf_scr.dtype)   # cast to bf16 exactly once
        m_scr[...] = jnp.full(m_scr.shape, _NEG_BIG, dtype=m_scr.dtype)
        l_scr[...] = jnp.zeros(l_scr.shape, dtype=l_scr.dtype)

    logits = (jnp.dot(hbf_scr[...], wout_ref[...],
                      preferred_element_type=jnp.float32)
              + bout_ref[...])                                      # (TB, TV) f32
    logits_bf = logits.astype(logits_ref.dtype)
    logits_ref[...] = logits_bf                   # bf16 intermediate (half HBM)
    lq = logits_bf.astype(jnp.float32)            # lse over exactly what we stored

    m_prev = m_scr[...]
    m_new = jnp.maximum(m_prev, jnp.max(lq, axis=-1, keepdims=True))
    l_scr[...] = (l_scr[...] * jnp.exp(m_prev - m_new)
                  + jnp.sum(jnp.exp(lq - m_new), axis=-1, keepdims=True))
    m_scr[...] = m_new

    @pl.when(j == pl.num_programs(1) - 1)
    def _():
        lse_ref[...] = m_scr[...] + jnp.log(l_scr[...])


# --------------------------------------------------------------------------
# Kernel B2: finalize  logp = logits - lse  (full-batch, lane-dense blocks)
# --------------------------------------------------------------------------
def _logsoftmax_finalize_kernel(logits_ref, lse_ref, logp_ref):
    logp_ref[...] = logits_ref[...].astype(jnp.float32) - lse_ref[...]


# --------------------------------------------------------------------------
# Parameters
# --------------------------------------------------------------------------
def init_params(key, decoder_dict_size, hidden_size, emb_size):
    """f32 'master' weights in the fused-gate layout [r | z | n]."""
    H, E, V = hidden_size, emb_size, decoder_dict_size
    k = 1.0 / (H ** 0.5)
    keys = jax.random.split(key, 6)

    def u(kk, shape, s):
        return jax.random.uniform(kk, shape, jnp.float32, -s, s)

    w_i = u(keys[0], (E + H, 3 * H), k)      # rows [:E] multiply the embedding,
    w_h = u(keys[1], (H, 3 * H), k)          # rows [E:] multiply the context
    b_i = u(keys[2], (1, 3 * H), k)
    b_h = u(keys[3], (1, 3 * H), k)
    w_out = u(keys[4], (H, V), k)
    b_out = u(keys[5], (1, V), k)
    return dict(w_ie=w_i[:E], w_ic=w_i[E:], w_h=w_h, b_i=b_i, b_h=b_h,
                w_out=w_out, b_out=b_out)


def prepare_params(params, plan):
    """One-time weight prep (vocab padding + bf16 casts), hoisted off the
    per-decode-step critical path."""
    V, V_pad = plan["V"], plan["V_pad"]
    w_out, b_out = params["w_out"], params["b_out"]
    if V_pad != V:
        w_out = jnp.pad(w_out, ((0, 0), (0, V_pad - V)))
        b_out = jnp.pad(b_out, ((0, 0), (0, V_pad - V)),
                        constant_values=_NEG_BIG)
    bf = jnp.bfloat16
    return dict(
        w_ie=params["w_ie"].astype(bf),
        w_ic=params["w_ic"].astype(bf),
        w_h=params["w_h"].astype(bf),
        b_i=params["b_i"].astype(jnp.float32),
        b_h=params["b_h"].astype(jnp.float32),
        w_out=w_out.astype(bf),
        b_out=b_out.astype(jnp.float32),
    )


# --------------------------------------------------------------------------
# Wrapper (mirrors Decoder.forward)
# --------------------------------------------------------------------------
def decoder_step(inp, hidden, context_attn, params, plan):
    """inp (B,1,E), hidden (1,B,H), context_attn (B,1,H)  ->
       (log_probs (B,V), new_hidden (1,B,H))."""
    B, E, H = plan["B"], plan["E"], plan["H"]
    V, V_pad = plan["V"], plan["V_pad"]
    TB, B_pad = plan["TB"], plan["B_pad"]
    TV, n_bt, n_vt = plan["TV"], plan["n_bt"], plan["n_vt"]

    emb = _pad_rows(inp.reshape(B, E).astype(jnp.bfloat16), B_pad)
    ctx = _pad_rows(context_attn.reshape(B, H).astype(jnp.bfloat16), B_pad)
    h0 = _pad_rows(hidden.reshape(B, H).astype(jnp.float32), B_pad)

    weights = (params["w_ie"], params["w_ic"], params["w_h"],
               params["b_i"], params["b_h"], params["w_out"], params["b_out"])

    # NOTE: in an autoregressive decode loop, donate/alias the hidden-state
    # buffer across steps (jit donation / input_output_aliases) so it is not
    # re-allocated each step.

    if n_vt == 1:
        # ----- fused path: single pass, no logits intermediate --------------
        cost = pl.CostEstimate(
            flops=int(2 * B_pad * (3 * H * (E + 2 * H) + H * V_pad)),
            transcendentals=int(B_pad * (3 * H + V_pad)),
            bytes_accessed=int(2 * 3 * H * (E + 2 * H)
                               + n_bt * 2 * H * V_pad
                               + 4 * (6 * H + V_pad)
                               + 2 * B_pad * (E + H) + 4 * B_pad * H
                               + 4 * B_pad * (V_pad + H)),
        )
        logp, h_new = pl.pallas_call(
            _decoder_fused_kernel,
            out_shape=(jax.ShapeDtypeStruct((B_pad, V_pad), jnp.float32),
                       jax.ShapeDtypeStruct((B_pad, H), jnp.float32)),
            grid_spec=pltpu.PrefetchScalarGridSpec(
                num_scalar_prefetch=0,
                grid=(n_bt,),
                in_specs=[
                    pl.BlockSpec((TB, E), lambda i: (i, 0)),        # emb
                    pl.BlockSpec((TB, H), lambda i: (i, 0)),        # ctx
                    pl.BlockSpec((TB, H), lambda i: (i, 0)),        # h0
                    pl.BlockSpec((E, 3 * H), lambda i: (0, 0)),     # W_ie
                    pl.BlockSpec((H, 3 * H), lambda i: (0, 0)),     # W_ic
                    pl.BlockSpec((H, 3 * H), lambda i: (0, 0)),     # W_h
                    pl.BlockSpec((1, 3 * H), lambda i: (0, 0)),     # b_i
                    pl.BlockSpec((1, 3 * H), lambda i: (0, 0)),     # b_h
                    pl.BlockSpec((H, V_pad), lambda i: (0, 0)),     # w_out
                    pl.BlockSpec((1, V_pad), lambda i: (0, 0)),     # b_out
                ],
                out_specs=[
                    pl.BlockSpec((TB, V_pad), lambda i: (i, 0)),    # log-probs
                    pl.BlockSpec((TB, H), lambda i: (i, 0)),        # new hidden
                ],
            ),
            compiler_params=pltpu.CompilerParams(
                dimension_semantics=("parallel",),
                vmem_limit_bytes=plan["vmem_limit"]),
            cost_estimate=cost,
        )(emb, ctx, h0, *weights)
        return logp[:B, :V], h_new[:B].reshape(1, B, H)

    # ----- streamed path: vocab-tiled projection + online LSE ---------------
    cost = pl.CostEstimate(
        flops=int(2 * B_pad * (3 * H * (E + 2 * H) + H * V_pad)),
        transcendentals=int(B_pad * (3 * H + V_pad)),
        bytes_accessed=int(2 * 3 * H * (E + 2 * H)
                           + n_bt * 2 * H * V_pad                  # w_out stream
                           + 4 * (6 * H + V_pad)
                           + 2 * B_pad * (E + H) + 4 * B_pad * H
                           + 2 * B_pad * V_pad + 4 * B_pad * (H + 1)),
    )
    logits, lse, h_new = pl.pallas_call(
        _decoder_streamed_kernel,
        out_shape=(
            jax.ShapeDtypeStruct((B_pad, V_pad), jnp.bfloat16),   # bf16 logits
            jax.ShapeDtypeStruct((B_pad, 1), jnp.float32),        # log-sum-exp
            jax.ShapeDtypeStruct((B_pad, H), jnp.float32),        # new hidden
        ),
        grid_spec=pltpu.PrefetchScalarGridSpec(
            num_scalar_prefetch=0,
            grid=(n_bt, n_vt),
            in_specs=[
                pl.BlockSpec((TB, E), lambda i, j: (i, 0)),         # emb
                pl.BlockSpec((TB, H), lambda i, j: (i, 0)),         # ctx
                pl.BlockSpec((TB, H), lambda i, j: (i, 0)),         # h0
                pl.BlockSpec((E, 3 * H), lambda i, j: (0, 0)),      # W_ie
                pl.BlockSpec((H, 3 * H), lambda i, j: (0, 0)),      # W_ic
                pl.BlockSpec((H, 3 * H), lambda i, j: (0, 0)),      # W_h
                pl.BlockSpec((1, 3 * H), lambda i, j: (0, 0)),      # b_i
                pl.BlockSpec((1, 3 * H), lambda i, j: (0, 0)),      # b_h
                pl.BlockSpec((H, TV), lambda i, j: (0, j)),         # w_out tile
                pl.BlockSpec((1, TV), lambda i, j: (0, j)),         # b_out tile
            ],
            out_specs=[
                pl.BlockSpec((TB, TV), lambda i, j: (i, j)),        # bf16 logits
                pl.BlockSpec((TB, 1), lambda i, j: (i, 0)),         # lse
                pl.BlockSpec((TB, H), lambda i, j: (i, 0)),         # new hidden
            ],
            scratch_shapes=[
                pltpu.VMEM((TB, H), jnp.bfloat16),   # bf16 h_new cache
                pltpu.VMEM((TB, 1), jnp.float32),    # running max
                pltpu.VMEM((TB, 1), jnp.float32),    # running sum-exp
            ],
        ),
        compiler_params=pltpu.CompilerParams(
            dimension_semantics=("parallel", "arbitrary"),
            vmem_limit_bytes=plan["vmem_limit"]),
        cost_estimate=cost,
    )(emb, ctx, h0, *weights)

    # Finalize: logp = logits - lse, full-batch lane-dense blocks.
    logp = pl.pallas_call(
        _logsoftmax_finalize_kernel,
        out_shape=jax.ShapeDtypeStruct((B_pad, V_pad), jnp.float32),
        grid_spec=pltpu.PrefetchScalarGridSpec(
            num_scalar_prefetch=0,
            grid=(n_vt,),
            in_specs=[
                pl.BlockSpec((B_pad, TV), lambda j: (0, j)),
                pl.BlockSpec((B_pad, 1), lambda j: (0, 0)),
            ],
            out_specs=pl.BlockSpec((B_pad, TV), lambda j: (0, j)),
        ),
        compiler_params=pltpu.CompilerParams(
            dimension_semantics=("parallel",),
            vmem_limit_bytes=plan["vmem_limit"]),
    )(logits, lse)

    return logp[:B, :V], h_new[:B].reshape(1, B, H)


# --------------------------------------------------------------------------
# Pure-JAX reference (same bf16-weight / f32-accumulate recipe)
# --------------------------------------------------------------------------
def _reference(inp, hidden, context_attn, params, quantize_logits):
    B = inp.shape[0]
    H = hidden.shape[-1]
    f32, bf = jnp.float32, jnp.bfloat16
    emb = inp.reshape(B, -1).astype(bf)
    ctx = context_attn.reshape(B, -1).astype(bf)
    h = hidden.reshape(B, H).astype(f32)
    gi = (jnp.dot(emb, params["w_ie"].astype(bf), preferred_element_type=f32)
          + jnp.dot(ctx, params["w_ic"].astype(bf), preferred_element_type=f32)
          + params["b_i"])
    gh = (jnp.dot(h.astype(bf), params["w_h"].astype(bf),
                  preferred_element_type=f32) + params["b_h"])
    r = jax.nn.sigmoid(gi[:, :H] + gh[:, :H])
    z = jax.nn.sigmoid(gi[:, H:2 * H] + gh[:, H:2 * H])
    n = jnp.tanh(gi[:, 2 * H:] + r * gh[:, 2 * H:])
    h_new = (1.0 - z) * n + z * h
    logits = (jnp.dot(h_new.astype(bf), params["w_out"].astype(bf),
                      preferred_element_type=f32) + params["b_out"])
    if quantize_logits:          # streamed path stores logits in bf16
        logits = logits.astype(bf).astype(f32)
    return jax.nn.log_softmax(logits, axis=1), h_new.reshape(1, B, H)


if __name__ == "__main__":
    B, emb_size, hidden_size, vocab = 2, 32, 32, 64

    key = jax.random.PRNGKey(0)
    k_in, k_ctx, k_h, k_p = jax.random.split(key, 4)
    inp = jax.random.normal(k_in, (B, 1, emb_size), jnp.float32)
    context_attn = jax.random.normal(k_ctx, (B, 1, hidden_size), jnp.float32)
    hidden = jax.random.normal(k_h, (1, B, hidden_size), jnp.float32)

    # ---- path 1: vocab fits one VMEM tile -> fully fused kernel ------------
    raw = init_params(k_p, vocab, hidden_size, emb_size)
    plan = make_plan(B, emb_size, hidden_size, vocab)
    prep = prepare_params(raw, plan)                 # one-time weight prep
    step = jax.jit(functools.partial(decoder_step, plan=plan))

    log_probs, new_hidden = step(inp, hidden, context_attn, prep)
    jax.block_until_ready((log_probs, new_hidden))

    assert log_probs.shape == (B, vocab)
    assert new_hidden.shape == (1, B, hidden_size)
    assert bool(jnp.allclose(jnp.sum(jnp.exp(log_probs), axis=-1), 1.0,
                             atol=1e-3))
    ref_lp, ref_h = _reference(inp, hidden, context_attn, raw,
                               quantize_logits=False)
    assert bool(jnp.allclose(new_hidden, ref_h, atol=1e-2, rtol=1e-2))
    assert bool(jnp.allclose(log_probs, ref_lp, atol=2e-2, rtol=2e-2))

    # ---- path 2: force vocab streaming (cap TV) to exercise the online-LSE
    #              + bf16-logits + large-block finalize path ------------------
    vocab2 = 512
    raw2 = init_params(k_p, vocab2, hidden_size, emb_size)
    plan2 = make_plan(B, emb_size, hidden_size, vocab2, max_tv=128)
    assert plan2["n_vt"] > 1
    prep2 = prepare_params(raw2, plan2)
    step2 = jax.jit(functools.partial(decoder_step, plan=plan2))

    log_probs2, new_hidden2 = step2(inp, hidden, context_attn, prep2)
    jax.block_until_ready((log_probs2, new_hidden2))

    assert log_probs2.shape == (B, vocab2)
    assert bool(jnp.allclose(jnp.sum(jnp.exp(log_probs2), axis=-1), 1.0,
                             atol=1e-2))
    ref_lp2, ref_h2 = _reference(inp, hidden, context_attn, raw2,
                                 quantize_logits=True)
    assert bool(jnp.allclose(new_hidden2, ref_h2, atol=1e-2, rtol=1e-2))
    assert bool(jnp.allclose(log_probs2, ref_lp2, atol=3e-2, rtol=3e-2))

    print("KERNEL_OK")
</pallas_src>

<mosaic_0001>
module attributes {stable_mosaic.version = 11 : i64} {
  func.func @_decoder_fused_kernel(%arg0: i32, %arg1: memref<8x32xbf16, #tpu.memory_space<vmem>>, %arg2: memref<8x32xbf16, #tpu.memory_space<vmem>>, %arg3: memref<8x32xf32, #tpu.memory_space<vmem>>, %arg4: memref<32x96xbf16, #tpu.memory_space<vmem>>, %arg5: memref<32x96xbf16, #tpu.memory_space<vmem>>, %arg6: memref<32x96xbf16, #tpu.memory_space<vmem>>, %arg7: memref<1x96xf32, #tpu.memory_space<vmem>>, %arg8: memref<1x96xf32, #tpu.memory_space<vmem>>, %arg9: memref<32x128xbf16, #tpu.memory_space<vmem>>, %arg10: memref<1x128xf32, #tpu.memory_space<vmem>>, %arg11: memref<8x128xf32, #tpu.memory_space<vmem>>, %arg12: memref<8x32xf32, #tpu.memory_space<vmem>>) attributes {dimension_semantics = [#tpu.dimension_semantics<parallel>], iteration_bounds = array<i64: 1>, scalar_prefetch = 0 : i64, scratch_operands = 0 : i64, tpu.core_type = #tpu.core_type<tc>, window_params = [{transform_indices = @transform_0, window_bounds = array<i64: 8, 32>}, {transform_indices = @transform_1, window_bounds = array<i64: 8, 32>}, {transform_indices = @transform_2, window_bounds = array<i64: 8, 32>}, {pipeline_mode = #tpu.pipeline_mode<synchronous>, transform_indices = @transform_3, window_bounds = array<i64: 32, 96>}, {pipeline_mode = #tpu.pipeline_mode<synchronous>, transform_indices = @transform_4, window_bounds = array<i64: 32, 96>}, {pipeline_mode = #tpu.pipeline_mode<synchronous>, transform_indices = @transform_5, window_bounds = array<i64: 32, 96>}, {pipeline_mode = #tpu.pipeline_mode<synchronous>, transform_indices = @transform_6, window_bounds = array<i64: 1, 96>}, {pipeline_mode = #tpu.pipeline_mode<synchronous>, transform_indices = @transform_7, window_bounds = array<i64: 1, 96>}, {pipeline_mode = #tpu.pipeline_mode<synchronous>, transform_indices = @transform_8, window_bounds = array<i64: 32, 128>}, {pipeline_mode = #tpu.pipeline_mode<synchronous>, transform_indices = @transform_9, window_bounds = array<i64: 1, 128>}, {transform_indices = @transform_10, window_bounds = array<i64: 8, 128>}, {transform_indices = @transform_11, window_bounds = array<i64: 8, 32>}]} {
    %c0 = arith.constant 0 : index
    %c0_0 = arith.constant 0 : index
    %0 = vector.load %arg1[%c0, %c0_0] : memref<8x32xbf16, #tpu.memory_space<vmem>>, vector<8x32xbf16>
    %c0_1 = arith.constant 0 : index
    %c0_2 = arith.constant 0 : index
    %1 = vector.load %arg2[%c0_1, %c0_2] : memref<8x32xbf16, #tpu.memory_space<vmem>>, vector<8x32xbf16>
    %c0_3 = arith.constant 0 : index
    %c0_4 = arith.constant 0 : index
    %2 = vector.load %arg3[%c0_3, %c0_4] : memref<8x32xf32, #tpu.memory_space<vmem>>, vector<8x32xf32>
    %c0_5 = arith.constant 0 : index
    %c0_6 = arith.constant 0 : index
    %3 = vector.load %arg4[%c0_5, %c0_6] : memref<32x96xbf16, #tpu.memory_space<vmem>>, vector<32x96xbf16>
    %cst = arith.constant dense<0.000000e+00> : vector<8x96xf32>
    %4 = tpu.matmul %0, %3, %cst {dimension_numbers = #tpu.dot_dimension_numbers<[1], [0], [0], [1], [0, 0, 1, 1], [], []>} : vector<8x32xbf16>, vector<32x96xbf16>, vector<8x96xf32> -> vector<8x96xf32>
    %c0_7 = arith.constant 0 : index
    %c0_8 = arith.constant 0 : index
    %5 = vector.load %arg5[%c0_7, %c0_8] : memref<32x96xbf16, #tpu.memory_space<vmem>>, vector<32x96xbf16>
    %cst_9 = arith.constant dense<0.000000e+00> : vector<8x96xf32>
    %6 = tpu.matmul %1, %5, %cst_9 {dimension_numbers = #tpu.dot_dimension_numbers<[1], [0], [0], [1], [0, 0, 1, 1], [], []>} : vector<8x32xbf16>, vector<32x96xbf16>, vector<8x96xf32> -> vector<8x96xf32>
    %7 = arith.addf %4, %6 : vector<8x96xf32>
    %c0_10 = arith.constant 0 : index
    %c0_11 = arith.constant 0 : index
    %8 = vector.load %arg7[%c0_10, %c0_11] : memref<1x96xf32, #tpu.memory_space<vmem>>, vector<1x96xf32>
    %9 = vector.broadcast %8 : vector<1x96xf32> to vector<8x96xf32>
    %10 = arith.addf %7, %9 : vector<8x96xf32>
    %11 = arith.truncf %2 : vector<8x32xf32> to vector<8x32xbf16>
    %c0_12 = arith.constant 0 : index
    %c0_13 = arith.constant 0 : index
    %12 = vector.load %arg6[%c0_12, %c0_13] : memref<32x96xbf16, #tpu.memory_space<vmem>>, vector<32x96xbf16>
    %cst_14 = arith.constant dense<0.000000e+00> : vector<8x96xf32>
    %13 = tpu.matmul %11, %12, %cst_14 {dimension_numbers = #tpu.dot_dimension_numbers<[1], [0], [0], [1], [0, 0, 1, 1], [], []>} : vector<8x32xbf16>, vector<32x96xbf16>, vector<8x96xf32> -> vector<8x96xf32>
    %c0_15 = arith.constant 0 : index
    %c0_16 = arith.constant 0 : index
    %14 = vector.load %arg8[%c0_15, %c0_16] : memref<1x96xf32, #tpu.memory_space<vmem>>, vector<1x96xf32>
    %15 = vector.broadcast %14 : vector<1x96xf32> to vector<8x96xf32>
    %16 = arith.addf %13, %15 : vector<8x96xf32>
    %17 = vector.extract_strided_slice %10 {offsets = [0, 0], sizes = [8, 32], strides = [1, 1]} : vector<8x96xf32> to vector<8x32xf32>
    %18 = vector.extract_strided_slice %16 {offsets = [0, 0], sizes = [8, 32], strides = [1, 1]} : vector<8x96xf32> to vector<8x32xf32>
    %19 = arith.addf %17, %18 : vector<8x32xf32>
    %20 = arith.negf %19 : vector<8x32xf32>
    %21 = math.exp %20 : vector<8x32xf32>
    %cst_17 = arith.constant 1.000000e+00 : f32
    %22 = vector.broadcast %cst_17 : f32 to vector<8x32xf32>
    %23 = arith.addf %22, %21 : vector<8x32xf32>
    %24 = arith.divf %22, %23 : vector<8x32xf32>
    %25 = vector.extract_strided_slice %10 {offsets = [0, 32], sizes = [8, 32], strides = [1, 1]} : vector<8x96xf32> to vector<8x32xf32>
    %26 = vector.extract_strided_slice %16 {offsets = [0, 32], sizes = [8, 32], strides = [1, 1]} : vector<8x96xf32> to vector<8x32xf32>
    %27 = arith.addf %25, %26 : vector<8x32xf32>
    %28 = arith.negf %27 : vector<8x32xf32>
    %29 = math.exp %28 : vector<8x32xf32>
    %cst_18 = arith.constant 1.000000e+00 : f32
    %30 = vector.broadcast %cst_18 : f32 to vector<8x32xf32>
    %31 = arith.addf %30, %29 : vector<8x32xf32>
    %32 = arith.divf %30, %31 : vector<8x32xf32>
    %33 = vector.extract_strided_slice %10 {offsets = [0, 64], sizes = [8, 32], strides = [1, 1]} : vector<8x96xf32> to vector<8x32xf32>
    %34 = vector.extract_strided_slice %16 {offsets = [0, 64], sizes = [8, 32], strides = [1, 1]} : vector<8x96xf32> to vector<8x32xf32>
    %35 = arith.mulf %24, %34 : vector<8x32xf32>
    %36 = arith.addf %33, %35 : vector<8x32xf32>
    %37 = math.tanh %36 : vector<8x32xf32>
    %cst_19 = arith.constant 1.000000e+00 : f32
    %38 = vector.broadcast %cst_19 : f32 to vector<8x32xf32>
    %39 = arith.subf %38, %32 : vector<8x32xf32>
    %40 = arith.mulf %39, %37 : vector<8x32xf32>
    %41 = arith.mulf %32, %2 : vector<8x32xf32>
    %42 = arith.addf %40, %41 : vector<8x32xf32>
    %c0_20 = arith.constant 0 : index
    %c0_21 = arith.constant 0 : index
    %43 = vector.load %arg12[%c0_20, %c0_21] : memref<8x32xf32, #tpu.memory_space<vmem>>, vector<8x32xf32>
    tpu.vector_store %arg12[%c0_20, %c0_21], %42 {strides = array<i32>} : memref<8x32xf32, #tpu.memory_space<vmem>>, vector<8x32xf32>,
    %44 = arith.truncf %42 : vector<8x32xf32> to vector<8x32xbf16>
    %c0_22 = arith.constant 0 : index
    %c0_23 = arith.constant 0 : index
    %45 = vector.load %arg9[%c0_22, %c0_23] : memref<32x128xbf16, #tpu.memory_space<vmem>>, vector<32x128xbf16>
    %cst_24 = arith.constant dense<0.000000e+00> : vector<8x128xf32>
    %46 = tpu.matmul %44, %45, %cst_24 {dimension_numbers = #tpu.dot_dimension_numbers<[1], [0], [0], [1], [0, 0, 1, 1], [], []>} : vector<8x32xbf16>, vector<32x128xbf16>, vector<8x128xf32> -> vector<8x128xf32>
    %c0_25 = arith.constant 0 : index
    %c0_26 = arith.constant 0 : index
    %47 = vector.load %arg10[%c0_25, %c0_26] : memref<1x128xf32, #tpu.memory_space<vmem>>, vector<1x128xf32>
    %48 = vector.broadcast %47 : vector<1x128xf32> to vector<8x128xf32>
    %49 = arith.addf %46, %48 : vector<8x128xf32>
    %cst_27 = arith.constant dense<0xFF800000> : vector<8xf32>
    %50 = vector.multi_reduction <maximumf>, %49, %cst_27 [1] : vector<8x128xf32> to vector<8xf32>
    %51 = vector.shape_cast %50 : vector<8xf32> to vector<8x1xf32>
    %52 = vector.broadcast %51 : vector<8x1xf32> to vector<8x128xf32>
    %53 = arith.subf %49, %52 : vector<8x128xf32>
    %54 = math.exp %53 : vector<8x128xf32>
    %cst_28 = arith.constant dense<0.000000e+00> : vector<8xf32>
    %55 = vector.multi_reduction <add>, %54, %cst_28 [1] : vector<8x128xf32> to vector<8xf32>
    %56 = vector.shape_cast %55 : vector<8xf32> to vector<8x1xf32>
    %57 = math.log %56 : vector<8x1xf32>
    %58 = arith.addf %51, %57 : vector<8x1xf32>
    %59 = vector.broadcast %58 : vector<8x1xf32> to vector<8x128xf32>
    %60 = arith.subf %49, %59 : vector<8x128xf32>
    %c0_29 = arith.constant 0 : index
    %c0_30 = arith.constant 0 : index
    %61 = vector.load %arg11[%c0_29, %c0_30] : memref<8x128xf32, #tpu.memory_space<vmem>>, vector<8x128xf32>
    tpu.vector_store %arg11[%c0_29, %c0_30], %60 {strides = array<i32>} : memref<8x128xf32, #tpu.memory_space<vmem>>, vector<8x128xf32>,
    return
  }
  func.func @transform_0(%arg0: i32) -> (i32, i32) {
    %c0_i32 = arith.constant 0 : i32
    %c0_i32_0 = arith.constant 0 : i32
    return %arg0, %c0_i32 : i32, i32
  }
  func.func @transform_1(%arg0: i32) -> (i32, i32) {
    %c0_i32 = arith.constant 0 : i32
    %c0_i32_0 = arith.constant 0 : i32
    return %arg0, %c0_i32 : i32, i32
  }
  func.func @transform_2(%arg0: i32) -> (i32, i32) {
    %c0_i32 = arith.constant 0 : i32
    %c0_i32_0 = arith.constant 0 : i32
    return %arg0, %c0_i32 : i32, i32
  }
  func.func @transform_3(%arg0: i32) -> (i32, i32) {
    %c0_i32 = arith.constant 0 : i32
    %c0_i32_0 = arith.constant 0 : i32
    %c0_i32_1 = arith.constant 0 : i32
    return %c0_i32, %c0_i32_0 : i32, i32
  }
  func.func @transform_4(%arg0: i32) -> (i32, i32) {
    %c0_i32 = arith.constant 0 : i32
    %c0_i32_0 = arith.constant 0 : i32
    %c0_i32_1 = arith.constant 0 : i32
    return %c0_i32, %c0_i32_0 : i32, i32
  }
  func.func @transform_5(%arg0: i32) -> (i32, i32) {
    %c0_i32 = arith.constant 0 : i32
    %c0_i32_0 = arith.constant 0 : i32
    %c0_i32_1 = arith.constant 0 : i32
    return %c0_i32, %c0_i32_0 : i32, i32
  }
  func.func @transform_6(%arg0: i32) -> (i32, i32) {
    %c0_i32 = arith.constant 0 : i32
    %c0_i32_0 = arith.constant 0 : i32
    %c0_i32_1 = arith.constant 0 : i32
    return %c0_i32, %c0_i32_0 : i32, i32
  }
  func.func @transform_7(%arg0: i32) -> (i32, i32) {
    %c0_i32 = arith.constant 0 : i32
    %c0_i32_0 = arith.constant 0 : i32
    %c0_i32_1 = arith.constant 0 : i32
    return %c0_i32, %c0_i32_0 : i32, i32
  }
  func.func @transform_8(%arg0: i32) -> (i32, i32) {
    %c0_i32 = arith.constant 0 : i32
    %c0_i32_0 = arith.constant 0 : i32
    %c0_i32_1 = arith.constant 0 : i32
    return %c0_i32, %c0_i32_0 : i32, i32
  }
  func.func @transform_9(%arg0: i32) -> (i32, i32) {
    %c0_i32 = arith.constant 0 : i32
    %c0_i32_0 = arith.constant 0 : i32
    %c0_i32_1 = arith.constant 0 : i32
    return %c0_i32, %c0_i32_0 : i32, i32
  }
  func.func @transform_10(%arg0: i32) -> (i32, i32) {
    %c0_i32 = arith.constant 0 : i32
    %c0_i32_0 = arith.constant 0 : i32
    return %arg0, %c0_i32 : i32, i32
  }
  func.func @transform_11(%arg0: i32) -> (i32, i32) {
    %c0_i32 = arith.constant 0 : i32
    %c0_i32_0 = arith.constant 0 : i32
    return %arg0, %c0_i32 : i32, i32
  }
}

</mosaic_0001>

<bundles_post_ra>
// kernel: decoder_step.1
= control target key start
LH: loop header
LB: loop body
LE: loop exit
PB: predicated region body
PF: predicated region fallthrough
CT: control target
= control target key end

     0   :  { %17 = vsyncpa [#allocation3], 0  ;;  %s673_s0 = inlined_call_operand.vmem [shape: bf16[8,32], index: 0, kind: input, shape index: {}]   ;;  %s674_s1 = inlined_call_operand.vmem [shape: bf16[8,32], index: 1, kind: input, shape index: {}]   ;;  %s675_s2 = inlined_call_operand.vmem [shape: f32[8,32], index: 2, kind: input, shape index: {}]   ;;  %s676_s3 = inlined_call_operand.vmem [shape: bf16[32,96], index: 3, kind: input, shape index: {}]   ;;  %s677_s4 = inlined_call_operand.vmem [shape: bf16[32,96], index: 4, kind: input, shape index: {}]   ;;  %s678_s5 = inlined_call_operand.vmem [shape: bf16[32,96], index: 5, kind: input, shape index: {}]   ;;  %s679_s6 = inlined_call_operand.vmem [shape: f32[1,96], index: 6, kind: input, shape index: {}]   ;;  %s680_s7 = inlined_call_operand.hbm [shape: f32[1,96], index: 7, kind: input, shape index: {}]   ;;  %s681_s8 = inlined_call_operand.vmem [shape: bf16[32,128], index: 8, kind: input, shape index: {}]   ;;  %s682_s9 = inlined_call_operand.hbm [shape: f32[1,128], index: 9, kind: input, shape index: {}]   ;;  %s683_s10 = inlined_call_operand.vmem [shape: f32[8,128], index: 10, kind: output, shape index: {0}]   ;;  %s684_s11 = inlined_call_operand.vmem [shape: f32[8,32], index: 11, kind: output, shape index: {1}]  }
   0x1   :  { %18 = vsyncpa [#allocation5], 0  ;;  %s519_s17 = smov [#allocation2]   ;;  %s520_s19 = smov [#allocation4]  }
   0x2   :  { %s39_s18 = sshll.u32 %s519_s17, 4  ;;  %s51_s20 = sshll.u32 %s520_s19, 4  ;;  %s40_s18 = int_to_ptr.vmem [resolvable:$true] %s39_s18  ;;  %s52_s20 = int_to_ptr.vmem [resolvable:$true] %s51_s20 }
   0x3   :  { %s471_s23 = scalar_lea.hbm %s680_s7, 16 }
   0x4   :  { %p472_p0 = scmp.ne.s32.totalorder %s680_s7, %s471_s23  ;;  %p475_p1 = scmp.lt.u32.totalorder %s471_s23, %s680_s7 }
   0x6   :  { %p477_p2 = pnand %p475_p1, %p472_p0 }
   0x8   :  { %480 = shalt.err (!%p477_p2)
}
   0x9   :  { %s481_s28 = scalar_lea.vmem %s40_s18, 16  ;;  %s485_s29 = scalar_lea.vmem %s40_s18, 32 }
   0xa   :  { %p482_p3 = scmp.ne.s32.totalorder %s40_s18, %s481_s28  ;;  %p486_p4 = scmp.lt.s32.totalorder %s40_s18, %s40_s18 }
   0xb   :  { %p487_p5 = scmp.lt.s32.totalorder %s485_s29, %s481_s28 }
   0xd   :  { %p488_p6 = por %p487_p5, %p486_p4 }
   0xf   :  { %p489_p7 = pnand %p488_p6, %p482_p3 }
  0x11   :  { %492 = shalt.err (!%p489_p7)
}
  0x12   :  { %42 = dma.hbm_to_vmem [thread:$0]  %s680_s7, 16, %s40_s18, [#allocation3]  }
  0x13   :  { %s493_s15 = scalar_lea.hbm %s682_s9, 16 }
  0x14   :  { %p494_p8 = scmp.ne.s32.totalorder %s682_s9, %s493_s15  ;;  %p497_p9 = scmp.lt.u32.totalorder %s493_s15, %s682_s9 }
  0x16   :  { %p499_p10 = pnand %p497_p9, %p494_p8 }
  0x18   :  { %502 = shalt.err (!%p499_p10)
}
  0x19   :  { %s503_s22 = scalar_lea.vmem %s52_s20, 16  ;;  %s507_s23 = scalar_lea.vmem %s52_s20, 32 }
  0x1a   :  { %p504_p11 = scmp.ne.s32.totalorder %s52_s20, %s503_s22  ;;  %p508_p12 = scmp.lt.s32.totalorder %s52_s20, %s52_s20 }
  0x1b   :  { %p509_p13 = scmp.lt.s32.totalorder %s507_s23, %s503_s22 }
  0x1d   :  { %p510_p0 = por %p509_p13, %p508_p12 }
  0x1f   :  { %p511_p1 = pnand %p510_p0, %p504_p11 }
  0x21   :  { %514 = shalt.err (!%p511_p1)
}
  0x22   :  { %54 = dma.hbm_to_vmem [thread:$0]  %s682_s9, 16, %s52_s20, [#allocation5]  }
  0x23   :  { %515 = dma.done.wait [#allocation3], 16  }
  0x24   :  { %516 = vsyncadd [#allocation3], 4294967280 }
  0x25   :  { %517 = dma.done.wait [#allocation5], 16  }
  0x26   :  { %518 = vsyncadd [#allocation5], 4294967280  ;;  %v521_v0 = vmov 0.0   ;;  %vm522_vm0 = vmmov 0   ;;  %v453_v1 = vld [vmem:[%s677_s4] sm:$0xff]   ;;  %v455_v3 = vld [vmem:[%s677_s4 + $0x8] sm:$0xff]  }
  0x27   :  { %414 = vmatprep.subr.bf16.mxu0 %v521_v0  ;;  %422 = vmatprep.subr.bf16.mxu1 %v521_v0  ;;  %v454_v2 = vld [vmem:[%s676_s3] sm:$0xff]   ;;  %v456_v4 = vld [vmem:[%s676_s3 + $0x8] sm:$0xff]   ;;  %vm85_vm1 = vcmask 261120   ;;  %s524_s23 = smov 96   ;;  %s525_s7 = smov 32  }
  0x28   :  { %418 = vmatprep.mubr.msk.bf16.mxu0 %vm522_vm0, %v521_v0  ;;  %426 = vmatprep.mubr.msk.bf16.mxu1 %vm522_vm0, %v521_v0  ;;  %v63_v5 = vld [vmem:[%s674_s1] sm:$0xf]  ;;  %v458_v8 = vld [vmem:[%s678_s5 + $0x8] sm:$0xff]  }
  0x29   :  { %415 = vmatpush3.bf16.msra.mxu0 %v453_v1  ;;  %423 = vmatpush3.bf16.msra.mxu1 %v454_v2  ;;  %v62_v6 = vld [vmem:[%s673_s0] sm:$0xf]  ;;  %v460_v39 = vld [vmem:[%s681_s8 + $0x8] sm:$0xff]  }
  0x2a   :  { %416 = vmatprep.subr.bf16.mxu0 %v521_v0  ;;  %424 = vmatprep.subr.bf16.mxu1 %v521_v0  ;;  %v457_v7 = vld [vmem:[%s678_s5] sm:$0xff]  }
  0x2b   :  { %v64_v9 = vld [vmem:[%s675_s2] sm:$0xff]  ;;  %s523_s2 = smov 64  }
  0x2c   :  { %v192_v10 = vpack.c.bf16 %v64_v9, %v64_v9  ;;  %v393_v20 = vld [vmem:[#allocation2] ss:$0 sm:$0xff]  ;;  %v398_v48 = vld [vmem:[#allocation4] ss:$0 sm:$0xff] }
  0x2d   :  { %417 = vmatpush3.bf16.msra.mxu0 %v455_v3  ;;  %425 = vmatpush3.bf16.msra.mxu1 %v456_v4  ;;  %v392_v26 = vld [vmem:[%s679_s6] ss:$0 sm:$0xff] }
  0x2e   :  { %430 = vmatprep.subr.bf16.mxu0 %v521_v0  ;;  %438 = vmatprep.subr.bf16.mxu1 %v521_v0  ;;  %v459_v37 = vld [vmem:[%s681_s8] sm:$0xff]  }
  0x30   :  { %419 = vmatmul.mubr.msk.bf16.vlgmr.msra.gmra.mrb[0].mxu0 %vm85_vm1, %v63_v5  ;;  %427 = vmatmul.mubr.msk.bf16.vlgmr.msra.gmra.mrb[0].mxu1 %vm85_vm1, %v62_v6 }
  0x31   :  { %431 = vmatpush3.bf16.msra.mxu0 %v457_v7  ;;  %434 = vmatprep.mubr.msk.bf16.mxu0 %vm522_vm0, %v521_v0 }
  0x32   :  { %432 = vmatprep.subr.bf16.mxu0 %v521_v0  ;;  %442 = vmatprep.mubr.msk.bf16.mxu1 %vm522_vm0, %v521_v0 }
  0x33   :  { %439 = vmatpush3.bf16.msra.mxu1 %v459_v37 }
  0x34   :  { %440 = vmatprep.subr.bf16.mxu1 %v521_v0 }
  0x35   :  { %433 = vmatpush3.bf16.msra.mxu0 %v458_v8 }
  0x37   :  { %441 = vmatpush3.bf16.msra.mxu1 %v460_v39 }
  0x38   :  { %435 = vmatmul.mubr.msk.bf16.vlgmr.msra.gmra.mrb[4].mxu0 %vm85_vm1, %v192_v10 }
 0x103   :  { %v123_v11 = vpop.f32.mrb[0].mxu0  ;;  %v178_v13 = vpop.f32.mrb[0].mxu1 }
 0x104   :  { %v420_v12 = vpop.f32.mrb[1].mxu0  ;;  %v179_v14 = vadd.f32 %v178_v13, %v123_v11  ;;  %v428_v16 = vpop.f32.mrb[1].mxu1 }
 0x105   :  { %v126_v15 = vpop.f32.mrb[2].mxu0  ;;  %v181_v18 = vpop.f32.mrb[2].mxu1 }
 0x106   :  { %v421_v17 = vpop.f32.mrb[3].mxu0  ;;  %v429_v19 = vpop.f32.mrb[3].mxu1  ;;  %v191_v27 = vadd.f32 %v392_v26, %v179_v14 }
 0x10b   :  { %v253_v21 = vpop.f32.mrb[4].mxu0 }
 0x10c   :  { %v254_v22 = vadd.f32 %v393_v20, %v253_v21  ;;  %v436_v23 = vpop.f32.mrb[5].mxu0 }
 0x10d   :  { %v256_v24 = vpop.f32.mrb[6].mxu0 }
 0x10e   :  { %267 = vrot.lane.b32.xlu0 %v254_v22, %s523_s2  ;;  %v437_v25 = vpop.f32.mrb[7].mxu0  ;;  %v259_v28 = vadd.f32 %v254_v22, %v191_v27 }
 0x110   :  { %v397_v29 = vmul.f32 -1.442695, %v259_v28 }
 0x112   :  { %461 = vpow2.f32 %v397_v29 }
 0x11c   :  { %v462_v30 = vpop.eup %461 }
 0x11d   :  { %v263_v31 = vadd.f32 1.0, %v462_v30 }
 0x11f   :  { %463 = vrcp.f32 %v263_v31 }
 0x129   :  { %v464_v32 = vpop.eup %463 }
 0x12a   :  { %v277_v41 = vsub.f32 1.0, %v464_v32 }
 0x180   :  { %v268_v33 = vpop.permute.xlu0 %267 }
 0x181   :  { %v270_v34 = vmul.f32 %v464_v32, %v268_v33 }
 0x183   :  { %272 = vrot.lane.b32.xlu0 %v270_v34, %s523_s2 }
 0x1f5   :  { %v273_v35 = vpop.permute.xlu0 %272 }
 0x1f6   :  { %v275_v36 = vadd.f32 %v273_v35, %v191_v27 }
 0x1f8   :  { %465 = vtanh.f32 %v275_v36 }
 0x202   :  { %v466_v38 = vpop.eup %465 }
 0x203   :  { %279 = vrot.lane.b32.xlu1 %v466_v38, %s524_s23 }
 0x207   :  { %284 = vrot.lane.b32.xlu1 %v64_v9, %s525_s7 }
 0x275   :  { %v280_v40 = vpop.permute.xlu1 %279 }
 0x276   :  { %v282_v43 = vmul.f32 %v280_v40, %v277_v41 }
 0x279   :  { %v285_v42 = vpop.permute.xlu1 %284 }
 0x27a   :  { %v287_v44 = vmul.f32 %v464_v32, %v285_v42 }
 0x27c   :  { %v288_v45 = vadd.f32 %v287_v44, %v282_v43 }
 0x27e   :  { %v294_v46 = vpack.c.bf16 %v288_v45, %v288_v45 }
 0x280   :  { %307 = vrot.lane.b32.xlu0 %v294_v46, %s524_s23 }
 0x2f2   :  { %v308_v47 = vpop.permute.xlu0 %307 }
 0x2f3   :  { %443 = vmatmul.mubr.msk.bf16.vlgmr.msra.gmra.mrb[4].mxu1 %vm85_vm1, %v308_v47 }
 0x3c6   :  { %v358_v49 = vpop.f32.mrb[4].mxu1 }
 0x3c7   :  { %v359_v50 = vadd.f32 %v398_v48, %v358_v49  ;;  %v444_v51 = vpop.f32.mrb[5].mxu1 }
 0x3c8   :  { %v361_v52 = vpop.f32.mrb[6].mxu1 }
 0x3c9   :  { %364 = vmax.xlane.f32.xlu1 %v359_v50  ;;  %v445_v53 = vpop.f32.mrb[7].mxu1 }
 0x456   :  { %v365_v54 = vpop.xlane.xlu1 %364 }
 0x457   :  { %v366_v55 = vsub.f32 %v359_v50, %v365_v54 }
 0x459   :  { %v367_v56 = vmul.f32 1.442695, %v366_v55 }
 0x45b   :  { %467 = vpow2.f32 %v367_v56 }
 0x465   :  { %v468_v57 = vpop.eup %467 }
 0x466   :  { %369 = vadd.xlane.f32.xlu0 %v468_v57 }
 0x47c   :  { %290 = vrot.lane.b32.xlu0 %v288_v45, %s524_s23 }
 0x4f3   :  { %v370_v58 = vpop.xlane.xlu0 %369 }
 0x4f4   :  { %469 = vlog2.f32 %v370_v58 }
 0x4f7   :  { %v291_v59 = vpop.permute.xlu0 %290 }
 0x4f8   :  { %293 = vst.msk [vmem:[%s684_s11] sm:$0xff] %vm85_vm1, %v291_v59 }
 0x4fe   :  { %v470_v60 = vpop.eup %469 }
 0x4ff   :  { %v372_v61 = vmul.f32 0.6931472, %v470_v60 }
 0x501   :  { %v373_v62 = vadd.f32 %v372_v61, %v365_v54 }
 0x503   :  { %v374_v63 = vsub.f32 %v359_v50, %v373_v62 }
 0x505   :  { %375 = vst [vmem:[%s683_s10] sm:$0xff] %v374_v63 }
 0x506   :  { %384 = vsyncpa [#allocation3], 1 }
 0x507   :  { %385 = vsyncpa [#allocation5], 1 }

</bundles_post_ra>
